<compile_context>
chip_gen: v5e
topology: v5e:2x2
jax: 0.10.0
libtpu: 0.0.40
codegen_flags: <defaults>
</compile_context>

<pallas_src>
import functools

import numpy as np
import jax
import jax.numpy as jnp
from jax.experimental import pallas as pl
from jax.experimental.pallas import tpu as pltpu


_SQRT_2_OVER_PI = 0.7978845608028654
_GELU_COEF = 0.044715


def _gelu_tanh_np(x):
    return 0.5 * x * (1.0 + np.tanh(_SQRT_2_OVER_PI * (x + _GELU_COEF * x ** 3)))


# ----------------------------- host-side constants ---------------------------

@functools.lru_cache(maxsize=8)
def _build_constants(B, C, N, base_res):
    """Fold every linear stage of the surviving (res == N) path into 3 matrices."""
    R = B * C
    M = N // 2 + 1

    j = np.arange(N)
    ang_nn = 2.0 * np.pi * np.outer(j, j) / N

    # P: packed [Re(x_ft) | Im(x_ft)] (R, 2N)  ->  x = Re(ifft(x_ft, 'forward')) (R, N).
    # ifft with norm='forward' carries no 1/N (the forward transform does).
    P = np.concatenate([np.cos(ang_nn), -np.sin(ang_nn)], axis=0)            # (2N, N)

    # GG: channel-dim fft (norm='forward', factor 1/C), per batch (kron with I_B),
    # stacked [real; imag] rows.  The base-res-only path (N == base_res) has no
    # channel fft (plain 1-D rfft in the reference), hence identity there.
    if N > base_res:
        c = np.arange(C)
        ang_cc = 2.0 * np.pi * np.outer(c, c) / C
        G_r = np.kron(np.eye(B), np.cos(ang_cc) / C)
        G_i = np.kron(np.eye(B), -np.sin(ang_cc) / C)
    else:
        G_r = np.eye(R)
        G_i = np.zeros((R, R))
    GG = np.concatenate([G_r, G_i], axis=0)                                  # (2R, R)

    # KK: last-dim chain rfft('forward') -> irfft(n=N, 'forward') -> fft('forward'),
    # folded into one map on packed [v_r | v_i] (R, 2N) -> [out_r | out_i] (R, 2N).
    k = np.arange(M)
    ang_nm = 2.0 * np.pi * np.outer(j, k) / N                                # (N, M)
    Dr = np.cos(ang_nm) / N                                                  # rfft fwd (1/N)
    Di = -np.sin(ang_nm) / N
    # irfft (forward norm => unnormalized inverse); imaginary parts of DC and
    # Nyquist bins are ignored by irfft, hence d_k = 0 there.
    ck = np.full(M, 2.0)
    dk = np.full(M, 2.0)
    ck[0] = 1.0
    dk[0] = 0.0
    if N % 2 == 0:
        ck[-1] = 1.0
        dk[-1] = 0.0
    HR = ck[:, None] * np.cos(ang_nm.T)                                      # (M, N)
    HI = -dk[:, None] * np.sin(ang_nm.T)
    # final fft, norm='forward' (1/N), packed [Re | Im] output lanes.
    WW = np.concatenate([np.cos(ang_nn) / N, -np.sin(ang_nn) / N], axis=1)   # (N, 2N)
    Ea = HR @ WW                                                             # (M, 2N)
    Eb = HI @ WW
    # z = S_r @ Ea + S_i @ Eb with S = v @ (Dr + i Di)  =>  z = v_r @ Ka + v_i @ Kb.
    Ka = Dr @ Ea + Di @ Eb                                                   # (N, 2N)
    Kb = Dr @ Eb - Di @ Ea
    KK = np.concatenate([Ka, Kb], axis=0)                                    # (2N, 2N)

    f32 = lambda a: np.ascontiguousarray(a, dtype=np.float32)
    return f32(P), f32(GG), f32(KK)


# ------------------------------- Pallas kernel --------------------------------

def _fused_kernel(xfp_ref, p_ref, gg_ref, kk_ref, out_ref, *, rows):
    # (1) x = Re(ifft(x_ft, norm='forward')): one packed real dot (no zero planes).
    x = jnp.dot(xfp_ref[...], p_ref[...], preferred_element_type=jnp.float32)

    # (2) GELU (tanh approximation) — VPU/EUP, overlaps with the MXU dots.
    # TODO(synk): switch to exact erf GELU if the module's non_lin is
    # nn.GELU(approximate='none'); difference is ~1e-3.
    g = 0.5 * x * (1.0 + jnp.tanh(_SQRT_2_OVER_PI * (x + _GELU_COEF * (x * x * x))))

    # (3) channel-dim fft: stacked [real; imag] left-matrix, one dot.
    v = jnp.dot(gg_ref[...], g, preferred_element_type=jnp.float32)          # (2R, N)
    vw = jnp.concatenate([v[:rows, :], v[rows:, :]], axis=-1)                 # (R, 2N)

    # (4) rfft -> output-bin placement -> irfft(n=N) -> fft over the last dim,
    #     all folded host-side into KK: one dot, written straight to the output.
    out_ref[...] = jnp.dot(vw, kk_ref[...], preferred_element_type=jnp.float32)


# --------------------------------- wrapper ------------------------------------

def scale_eq_nonlin1d_forward(x_ft, *, base_res):
    """Port of scaleEqNonlin1d.forward (normalization=None, non_lin=GELU-tanh).

    x_ft: complex64 (B, C, N) Fourier transform of the input.
    Returns complex64 (B, C, N), matching the torch module's output.
    """
    B, C, N = x_ft.shape
    assert base_res % 2 == 0
    assert N >= base_res

    P, GG, KK = _build_constants(B, C, N, base_res)
    R = B * C

    # Packed real/imag input planes: (R, 2N) = [Re(x_ft) | Im(x_ft)].
    xfp = jnp.concatenate(
        [jnp.real(x_ft).astype(jnp.float32).reshape(R, N),
         jnp.imag(x_ft).astype(jnp.float32).reshape(R, N)], axis=-1)

    vmem = pl.BlockSpec(memory_space=pltpu.MemorySpace.VMEM)
    flops = 2 * (R * (2 * N) * N + (2 * R) * R * N + R * (2 * N) * (2 * N))
    bytes_accessed = 4 * (R * 2 * N            # xfp
                          + 2 * N * N          # P
                          + 2 * R * R          # GG
                          + 2 * N * 2 * N      # KK
                          + R * 2 * N)         # out

    out_pack = pl.pallas_call(
        functools.partial(_fused_kernel, rows=R),
        out_shape=jax.ShapeDtypeStruct((R, 2 * N), jnp.float32),
        in_specs=[vmem, vmem, vmem, vmem],
        out_specs=vmem,
        cost_estimate=pl.CostEstimate(flops=flops, transcendentals=R * N,
                                      bytes_accessed=bytes_accessed),
    )(xfp, jnp.asarray(P), jnp.asarray(GG), jnp.asarray(KK))

    out = (out_pack[:, :N] + 1j * out_pack[:, N:]).astype(jnp.complex64)
    return out.reshape(B, C, N)


# ------------------------------ NumPy reference -------------------------------

def _numpy_reference(x_ft, base_res):
    """NumPy reference of scaleEqNonlin1d.forward with normalization=None.

    Implements the final-resolution (res == N) path, which equals the full
    torch loop: that iteration's two writes cover every rfft bin of x_out
    (overwriting all earlier resolutions), and resample_1d at res == N is the
    identity.  For N == base_res only the 1-D rfft base path runs.
    """
    B, C, N = x_ft.shape
    x = np.real(np.fft.ifft(x_ft, axis=-1, norm='forward'))
    g = _gelu_tanh_np(x)
    if N > base_res:
        s = np.fft.rfft2(g, axes=(-2, -1), norm='forward')
    else:
        s = np.fft.rfft(g, axis=-1, norm='forward')
    y = np.fft.irfft(s, n=N, axis=-1, norm='forward')
    return np.fft.fft(y, axis=-1, norm='forward')


# ----------------------------------- main --------------------------------------

if __name__ == "__main__":
    B, C, N = 2, 4, 16
    base_res = 8

    key = jax.random.PRNGKey(0)
    k1, k2 = jax.random.split(key)
    xr = jax.random.normal(k1, (B, C, N), jnp.float32)
    xi = jax.random.normal(k2, (B, C, N), jnp.float32)
    x_ft = (xr + 1j * xi).astype(jnp.complex64)

    fwd = jax.jit(functools.partial(scale_eq_nonlin1d_forward, base_res=base_res))
    out = jax.block_until_ready(fwd(x_ft))

    assert out.shape == (B, C, N)
    assert out.dtype == jnp.complex64
    assert bool(jnp.all(jnp.isfinite(jnp.real(out))))
    assert bool(jnp.all(jnp.isfinite(jnp.imag(out))))

    # Numerical parity against the NumPy reference of the torch forward.
    ref = _numpy_reference(np.asarray(x_ft).astype(np.complex128), base_res)
    np.testing.assert_allclose(np.asarray(out), ref.astype(np.complex64),
                               rtol=2e-3, atol=2e-4)

    print("KERNEL_OK")
</pallas_src>

<mosaic_0001>
module attributes {stable_mosaic.version = 11 : i64} {
  func.func @_fused_kernel(%arg0: memref<8x32xf32, #tpu.memory_space<vmem>>, %arg1: memref<32x16xf32, #tpu.memory_space<vmem>>, %arg2: memref<16x8xf32, #tpu.memory_space<vmem>>, %arg3: memref<32x32xf32, #tpu.memory_space<vmem>>, %arg4: memref<8x32xf32, #tpu.memory_space<vmem>>) attributes {dimension_semantics = [], scalar_prefetch = 0 : i64, scratch_operands = 0 : i64, tpu.core_type = #tpu.core_type<tc>} {
    %c0 = arith.constant 0 : index
    %c0_0 = arith.constant 0 : index
    %0 = vector.load %arg0[%c0, %c0_0] : memref<8x32xf32, #tpu.memory_space<vmem>>, vector<8x32xf32>
    %c0_1 = arith.constant 0 : index
    %c0_2 = arith.constant 0 : index
    %1 = vector.load %arg1[%c0_1, %c0_2] : memref<32x16xf32, #tpu.memory_space<vmem>>, vector<32x16xf32>
    %cst = arith.constant dense<0.000000e+00> : vector<8x16xf32>
    %2 = tpu.matmul %0, %1, %cst {dimension_numbers = #tpu.dot_dimension_numbers<[1], [0], [0], [1], [0, 0, 1, 1], [], []>} : vector<8x32xf32>, vector<32x16xf32>, vector<8x16xf32> -> vector<8x16xf32>
    %cst_3 = arith.constant 5.000000e-01 : f32
    %3 = vector.broadcast %cst_3 : f32 to vector<8x16xf32>
    %4 = arith.mulf %3, %2 : vector<8x16xf32>
    %5 = arith.mulf %2, %2 : vector<8x16xf32>
    %6 = arith.mulf %5, %2 : vector<8x16xf32>
    %cst_4 = arith.constant 4.471500e-02 : f32
    %7 = vector.broadcast %cst_4 : f32 to vector<8x16xf32>
    %8 = arith.mulf %7, %6 : vector<8x16xf32>
    %9 = arith.addf %2, %8 : vector<8x16xf32>
    %cst_5 = arith.constant 0.797884583 : f32
    %10 = vector.broadcast %cst_5 : f32 to vector<8x16xf32>
    %11 = arith.mulf %10, %9 : vector<8x16xf32>
    %12 = math.tanh %11 : vector<8x16xf32>
    %cst_6 = arith.constant 1.000000e+00 : f32
    %13 = vector.broadcast %cst_6 : f32 to vector<8x16xf32>
    %14 = arith.addf %13, %12 : vector<8x16xf32>
    %15 = arith.mulf %4, %14 : vector<8x16xf32>
    %c0_7 = arith.constant 0 : index
    %c0_8 = arith.constant 0 : index
    %16 = vector.load %arg2[%c0_7, %c0_8] : memref<16x8xf32, #tpu.memory_space<vmem>>, vector<16x8xf32>
    %cst_9 = arith.constant dense<0.000000e+00> : vector<16x16xf32>
    %17 = tpu.matmul %16, %15, %cst_9 {dimension_numbers = #tpu.dot_dimension_numbers<[1], [0], [0], [1], [0, 0, 1, 1], [], []>} : vector<16x8xf32>, vector<8x16xf32>, vector<16x16xf32> -> vector<16x16xf32>
    %18 = vector.extract_strided_slice %17 {offsets = [0, 0], sizes = [8, 16], strides = [1, 1]} : vector<16x16xf32> to vector<8x16xf32>
    %19 = vector.extract_strided_slice %17 {offsets = [8, 0], sizes = [8, 16], strides = [1, 1]} : vector<16x16xf32> to vector<8x16xf32>
    %20 = tpu.concatenate %18, %19 in 1 : vector<8x16xf32>, vector<8x16xf32> -> vector<8x32xf32>
    %c0_10 = arith.constant 0 : index
    %c0_11 = arith.constant 0 : index
    %21 = vector.load %arg3[%c0_10, %c0_11] : memref<32x32xf32, #tpu.memory_space<vmem>>, vector<32x32xf32>
    %cst_12 = arith.constant dense<0.000000e+00> : vector<8x32xf32>
    %22 = tpu.matmul %20, %21, %cst_12 {dimension_numbers = #tpu.dot_dimension_numbers<[1], [0], [0], [1], [0, 0, 1, 1], [], []>} : vector<8x32xf32>, vector<32x32xf32>, vector<8x32xf32> -> vector<8x32xf32>
    %c0_13 = arith.constant 0 : index
    %c0_14 = arith.constant 0 : index
    %23 = vector.load %arg4[%c0_13, %c0_14] : memref<8x32xf32, #tpu.memory_space<vmem>>, vector<8x32xf32>
    tpu.vector_store %arg4[%c0_13, %c0_14], %22 {strides = array<i32>} : memref<8x32xf32, #tpu.memory_space<vmem>>, vector<8x32xf32>,
    return
  }
}

</mosaic_0001>

<bundles_post_ra>
// kernel: custom-call.1
= control target key start
LH: loop header
LB: loop body
LE: loop exit
PB: predicated region body
PF: predicated region fallthrough
CT: control target
= control target key end

     0   :  { %s56_s0 = inlined_call_operand.hbm [shape: c64[2,4,16], index: 0, kind: input, shape index: {}]   ;;  %s57_s1 = inlined_call_operand.vmem [shape: f32[2,4,16], index: 1, kind: output, shape index: {}]  }
   0x1   :  { %s2_s8 = scalar_lea.hbm %s56_s0, 8 }
   0x2   :  { %3 = vsyncpa [#allocation0], 0  ;;  %s5_s9 = sshll.u32 %s2_s8, 4  ;;  %s7_s12 = sshll.u32 %s57_s1, 4  ;;  %s6_s9 = int_to_ptr.hbm [resolvable:$true] %s5_s9  ;;  %s8_s12 = int_to_ptr.vmem [resolvable:$true] %s7_s12 }
   0x3   :  { %10 = dma.hbm_to_vmem [thread:$0]  %s6_s9, 128, %s8_s12, [#allocation0] }
   0x4   :  { %38 = dma.done.wait [#allocation0], 128  }
   0x5   :  { %39 = vsyncadd [#allocation0], 4294967168 }
   0x6   :  { %13 = vsyncpa [#allocation0], 1 }

// kernel: custom-call
= control target key start
LH: loop header
LB: loop body
LE: loop exit
PB: predicated region body
PF: predicated region fallthrough
CT: control target
= control target key end

     0   :  { %2 = vsyncpa [#allocation0], 0  ;;  %s55_s0 = inlined_call_operand.hbm [shape: c64[2,4,16], index: 0, kind: input, shape index: {}]   ;;  %s56_s1 = inlined_call_operand.vmem [shape: f32[2,4,16], index: 1, kind: output, shape index: {}]  }
   0x1   :  { %s4_s8 = sshll.u32 %s55_s0, 4  ;;  %s6_s11 = sshll.u32 %s56_s1, 4  ;;  %s5_s8 = int_to_ptr.hbm [resolvable:$true] %s4_s8  ;;  %s7_s11 = int_to_ptr.vmem [resolvable:$true] %s6_s11 }
   0x2   :  { %9 = dma.hbm_to_vmem [thread:$0]  %s5_s8, 128, %s7_s11, [#allocation0] }
   0x3   :  { %37 = dma.done.wait [#allocation0], 128  }
   0x4   :  { %38 = vsyncadd [#allocation0], 4294967168 }
   0x5   :  { %12 = vsyncpa [#allocation0], 1 }

// kernel: custom-call.2
= control target key start
LH: loop header
LB: loop body
LE: loop exit
PB: predicated region body
PF: predicated region fallthrough
CT: control target
= control target key end

     0   :  { %s105_s0 = inlined_call_operand.vmem [shape: f32[2,4,16], index: 0, kind: input, shape index: {}]   ;;  %s106_s1 = inlined_call_operand.vmem [shape: f32[2,4,16], index: 1, kind: input, shape index: {}]   ;;  %s107_s2 = inlined_call_operand.hbm [shape: c64[2,4,16], index: 2, kind: output, shape index: {}]  }
   0x1   :  { %s3_s11 = scalar_lea.hbm %s107_s2, 8 }
   0x2   :  { %4 = vsyncpa [#allocation0], 0  ;;  %s6_s14 = sshll.u32 %s105_s0, 4  ;;  %s8_s17 = sshll.u32 %s107_s2, 4  ;;  %s7_s14 = int_to_ptr.vmem [resolvable:$true] %s6_s14  ;;  %s9_s17 = int_to_ptr.hbm [resolvable:$true] %s8_s17 }
   0x3   :  { %11 = dma.vmem_to_hbm [thread:$0]  %s7_s14, 128, %s9_s17, [#allocation0] }
   0x4   :  { %74 = dma.done.wait [#allocation0], 128  }
   0x5   :  { %75 = vsyncadd [#allocation0], 4294967168 }
   0x6   :  { %14 = vsyncpa [#allocation0], 1 }
   0x7   :  { %15 = vsyncpa [#allocation1], 0  ;;  %s17_s20 = sshll.u32 %s106_s1, 4  ;;  %s19_s21 = sshll.u32 %s3_s11, 4  ;;  %s18_s20 = int_to_ptr.vmem [resolvable:$true] %s17_s20  ;;  %s20_s21 = int_to_ptr.hbm [resolvable:$true] %s19_s21 }
   0x8   :  { %22 = dma.vmem_to_hbm [thread:$0]  %s18_s20, 128, %s20_s21, [#allocation1] }
   0x9   :  { %76 = dma.done.wait [#allocation1], 128  }
   0xa   :  { %77 = vsyncadd [#allocation1], 4294967168 }
   0xb   :  { %25 = vsyncpa [#allocation1], 1 }

// kernel: scale_eq_nonlin1d_forward.1
= control target key start
LH: loop header
LB: loop body
LE: loop exit
PB: predicated region body
PF: predicated region fallthrough
CT: control target
= control target key end

     0   :  { %9 = vsyncpa [#allocation3], 0  ;;  %s274_s0 = inlined_call_operand.vmem [shape: f32[8,32], index: 0, kind: input, shape index: {}]   ;;  %s275_s1 = inlined_call_operand.hbm [shape: f32[32,16], index: 1, kind: input, shape index: {}]   ;;  %s276_s2 = inlined_call_operand.vmem [shape: f32[16,8], index: 2, kind: input, shape index: {}]   ;;  %s277_s3 = inlined_call_operand.hbm [shape: f32[32,32], index: 3, kind: input, shape index: {}]   ;;  %s278_s4 = inlined_call_operand.vmem [shape: f32[8,32], index: 4, kind: output, shape index: {}]  }
   0x1   :  { %s17_s17 = sshll.u32 %s275_s1, 4  ;;  %s18_s17 = int_to_ptr.hbm [resolvable:$true] %s17_s17 }
   0x2   :  { %10 = vsyncpa [#allocation5], 0  ;;  %s223_s18 = smov [#allocation2]   ;;  %s32_s22 = sshll.u32 %s277_s3, 4  ;;  %s33_s22 = int_to_ptr.hbm [resolvable:$true] %s32_s22 }
   0x3   :  { %s19_s19 = sshll.u32 %s223_s18, 4  ;;  %s224_s23 = smov 128   ;;  %s20_s19 = int_to_ptr.vmem [resolvable:$true] %s19_s19 }
   0x4   :  { %s225_s24 = smov 8   ;;  %s226_s25 = smov [#allocation4]  }
   0x5   :  { %25 = dma.hbm_to_vmem [thread:$0]  %s18_s17, 512, %s20_s19, [#allocation3], %s224_s23, %s224_s23, %s225_s24  }
   0x6   :  { %s34_s26 = sshll.u32 %s226_s25, 4  ;;  %s35_s26 = int_to_ptr.vmem [resolvable:$true] %s34_s26 }
   0x7   :  { %40 = dma.hbm_to_vmem [thread:$0]  %s33_s22, 512, %s35_s26, [#allocation5], %s224_s23, %s224_s23, %s225_s24  }
   0x8   :  { %219 = dma.done.wait [#allocation3], 512  }
   0x9   :  { %220 = vsyncadd [#allocation3], 4294966784 }
   0xa   :  { %221 = dma.done.wait [#allocation5], 512  }
   0xb   :  { %222 = vsyncadd [#allocation5], 4294966784  ;;  %v53_v0 = vld [vmem:[#allocation2 + $0x18] sm:$0xff]  ;;  %v52_v1 = vld [vmem:[#allocation2 + $0x10] sm:$0xff]  ;;  %vm54_vm0 = vcmask 261120   ;;  %vm89_vm1 = vcmask 64512  }
   0xc   :  { %70 = vmatpush.msra.mxu0 %v53_v0  ;;  %v51_v2 = vld [vmem:[#allocation2 + $0x8] sm:$0xff]  ;;  %v50_v3 = vld [vmem:[#allocation2] sm:$0xff]  ;;  %v128_v17 = vld [vmem:[#allocation4 + $0x18] sm:$0xff]  ;;  %s227_s30 = smov 16   ;;  %vm123_vm2 = vcmask 130048  }
   0xd   :  { %v49_v4 = vld [vmem:[%s274_s0] sm:$0xff]  ;;  %v88_v15 = vld [vmem:[%s276_s2 + $0x8] sm:$0xff]  ;;  %v127_v18 = vld [vmem:[#allocation4 + $0x10] sm:$0xff]  ;;  %144 = vmatpush.msra.mxu2 %v128_v17 }
   0xe   :  { %71 = vmatpush.msra.mxu0 %v52_v1  ;;  %v87_v16 = vld [vmem:[%s276_s2] sm:$0xff]  ;;  %v126_v19 = vld [vmem:[#allocation4 + $0x8] sm:$0xff] }
   0xf   :  { %145 = vmatpush.msra.mxu2 %v127_v18  ;;  %v125_v21 = vld [vmem:[#allocation4] sm:$0xff] }
  0x10   :  { %72 = vmatpush.msra.mxu0 %v51_v2 }
  0x11   :  { %146 = vmatpush.msra.mxu2 %v126_v19 }
  0x12   :  { %73 = vmatpush.msra.mxu0 %v50_v3 }
  0x13   :  { %159 = vmatmul.msk.f32.vlgmr.msra.gmra.mxu0 %vm54_vm0, %v49_v4  ;;  %147 = vmatpush.msra.mxu2 %v125_v21 }
  0x90   :  { %v75_v5 = vpop.f32.mrf.mxu0 }
  0x91   :  { %v79_v6 = vmul.f32 %v75_v5, %v75_v5  ;;  %v78_v12 = vmul.f32 0.5, %v75_v5 }
  0x93   :  { %v80_v7 = vmul.f32 %v79_v6, %v75_v5 }
  0x95   :  { %v81_v8 = vmul.f32 0.044715, %v80_v7 }
  0x97   :  { %v82_v9 = vadd.f32 %v81_v8, %v75_v5 }
  0x99   :  { %v83_v10 = vmul.f32 0.7978846, %v82_v9 }
  0x9b   :  { %169 = vtanh.f32 %v83_v10 }
  0xa1   :  { %v170_v11 = vpop.eup %169 }
  0xa2   :  { %v85_v13 = vadd.f32 1.0, %v170_v11 }
  0xa4   :  { %v86_v14 = vmul.f32 %v85_v13, %v78_v12 }
  0xa6   :  { %111 = vmatpush.msra.mxu1 %v86_v14  ;;  %163 = vmatpush.msra.mxu3 %v86_v14 }
  0xa7   :  { %161 = vmatmul.msk.f32.vlgmr.msra.gmra.mxu3 %vm89_vm1, %v88_v15  ;;  %160 = vmatmul.msk.f32.vlgmr.msra.gmra.mxu1 %vm89_vm1, %v87_v16 }
 0x124   :  { %v113_v22 = vpop.f32.mrf.mxu1 }
 0x12a   :  { %v116_v20 = vpop.f32.mrf.mxu3 }
 0x12b   :  { %120 = vrot.lane.b32.xlu0 %v116_v20, %s227_s30 }
 0x19d   :  { %v121_v23 = vpop.permute.xlu0 %120 }
 0x19e   :  { %v124_v24 = vsel %vm123_vm2, %v113_v22, %v121_v23 }
 0x19f   :  { %162 = vmatmul.msk.f32.vlgmr.msra.gmra.mxu2 %vm54_vm0, %v124_v24 }
 0x222   :  { %v149_v25 = vpop.f32.mrf.mxu2 }
 0x223   :  { %152 = vst.msk [vmem:[%s278_s4] sm:$0xff] %vm54_vm0, %v149_v25 }
 0x224   :  { %157 = vsyncpa [#allocation3], 1 }
 0x225   :  { %158 = vsyncpa [#allocation5], 1 }

</bundles_post_ra>
